<compile_context>
chip_gen: v6e
topology: v6e:2x2x1
jax: 0.10.0
libtpu: 0.0.40
codegen_flags: <defaults>
</compile_context>

<pallas_src>
import functools

import jax
import jax.numpy as jnp
from jax.experimental import pallas as pl
from jax.experimental.pallas import tpu as pltpu

_MIB = 1024 * 1024


def _layernorm_kernel(x_ref, params_ref, o_ref, *, eps, apply_dtype):
    x = x_ref[...].astype(jnp.float32)                        # (row_block, C)
    c = x.shape[-1]

    mean = jnp.mean(x, axis=-1, keepdims=True)                # (row_block, 1)
    centered = x - mean
    # Unbiased variance (Bessel's correction) to match torch.std's default.
    var = jnp.sum(centered * centered, axis=-1, keepdims=True) / (c - 1)
    denom = jnp.sqrt(var) + eps                               # (row_block, 1)

    # Narrow EUP reciprocal + one Newton-Raphson refinement (~1-2 ulp f32),
    # then a cheap broadcast multiply instead of a full-width VPU divide.
    inv = pl.reciprocal(denom, approx=True)
    inv = inv * (2.0 - denom * inv)

    gamma = params_ref[0:1, :]                                # (1, C), apply_dtype
    beta = params_ref[1:2, :]                                 # (1, C), apply_dtype

    if apply_dtype == jnp.float32:
        out = gamma.astype(jnp.float32) * (centered * inv) + beta.astype(jnp.float32)
    else:
        # bf16 apply chain (v6e / v7x only): stats stay f32, scale/shift in bf16.
        normed = (centered * inv).astype(apply_dtype)
        out = gamma * normed + beta

    o_ref[...] = out.astype(o_ref.dtype)


def _round_up(x, m):
    return ((x + m - 1) // m) * m


def _sublane_min(dtype):
    return {1: 32, 2: 16, 4: 8}.get(jnp.dtype(dtype).itemsize, 8)


def _chip_info():
    """(num_tensorcores_per_chip, is_v5e, physical_vmem_bytes) with safe fallbacks."""
    num_cores, is_v5e = 1, False
    try:
        kind = jax.devices()[0].device_kind.lower()
        if "v7" in kind:
            num_cores = 2
        if "v5 lite" in kind or "v5e" in kind or "v5lite" in kind:
            is_v5e = True
    except Exception:
        pass
    try:
        physical = pltpu.get_tpu_info().vmem_capacity_bytes
    except Exception:
        physical = 64 * _MIB        # conservative default (v7x per-TensorCore)
    return num_cores, is_v5e, physical


def _vmem_limit_bytes(physical):
    """Scoped-VMEM request: ~0.75 of physical, capped, always with headroom."""
    return int(min(int(physical * 0.75), 96 * _MIB))


def _choose_row_block(rows, C, dtype, vmem_limit, num_cores):
    """Largest sublane-aligned row tile that fits the VMEM budget, keeping
    enough grid steps for the DMA pipeline (and both v7x TensorCores)."""
    itemsize = jnp.dtype(dtype).itemsize
    sub = _sublane_min(dtype)

    # Per tile row resident in VMEM: double-buffered input + double-buffered
    # output + ~4 full-width f32 temporaries in the body (x32, centered,
    # normed, scale/shift chain).
    bytes_per_row = C * (2 * itemsize + 2 * itemsize + 4 * 4)
    budget = int(vmem_limit * 0.75)
    rb = max(sub, budget // max(bytes_per_row, 1))

    # Keep enough grid steps to overlap DMA with compute; on v7x also keep
    # both TensorCores fed (>= 8 steps, even count).
    min_steps = 8 if num_cores >= 2 else 4
    rb = min(rb, max(sub, _round_up(pl.cdiv(rows, min_steps), sub)))
    rb = max(sub, (rb // sub) * sub)                 # multiple of sublane minimum

    if num_cores >= 2 and rows > rb:
        steps = pl.cdiv(rows, rb)
        if steps > 1 and steps % 2 == 1:
            rb_even = max(sub, _round_up(pl.cdiv(rows, steps + 1), sub))
            if pl.cdiv(rows, rb_even) % 2 == 0:
                rb = rb_even
    return rb


def layer_norm(x, gamma, beta, *, eps=1e-6, row_block=None):
    """x: (B, T, C); gamma, beta: (C,). Returns (B, T, C)."""
    B, T, C = x.shape
    rows = B * T

    num_cores, is_v5e, physical_vmem = _chip_info()
    vmem_limit = _vmem_limit_bytes(physical_vmem)
    if row_block is None:
        row_block = _choose_row_block(rows, C, x.dtype, vmem_limit, num_cores)

    # bf16 apply chain only where the VPU natively supports bf16 (not v5e).
    if x.dtype == jnp.bfloat16 and not is_v5e:
        apply_dtype = jnp.bfloat16
    else:
        apply_dtype = jnp.float32

    x2 = x.reshape(rows, C)
    # Hoisted param cast + single packed (2, C) parameter array (one DMA).
    params = jnp.stack([gamma, beta]).astype(apply_dtype)     # (2, C)

    grid = (pl.cdiv(rows, row_block),)    # ragged last block: reads are per-row
                                          # independent, OOB writes are masked.

    out2 = pl.pallas_call(
        functools.partial(_layernorm_kernel, eps=eps, apply_dtype=apply_dtype),
        out_shape=jax.ShapeDtypeStruct((rows, C), x.dtype),
        grid_spec=pltpu.PrefetchScalarGridSpec(
            num_scalar_prefetch=0,
            grid=grid,
            in_specs=[
                pl.BlockSpec((row_block, C), lambda i: (i, 0)),
                pl.BlockSpec((2, C), lambda i: (0, 0)),       # gamma/beta: constant block
            ],
            out_specs=pl.BlockSpec((row_block, C), lambda i: (i, 0)),
        ),
        compiler_params=pltpu.CompilerParams(
            dimension_semantics=("parallel",),
            vmem_limit_bytes=vmem_limit,
        ),
    )(x2, params)

    return out2.reshape(B, T, C)


def layer_norm_ref(x, gamma, beta, eps=1e-6):
    """Pure-JAX reference matching the PyTorch module exactly."""
    x32 = x.astype(jnp.float32)
    mean = jnp.mean(x32, axis=-1, keepdims=True)
    centered = x32 - mean
    c = x.shape[-1]
    var = jnp.sum(centered * centered, axis=-1, keepdims=True) / (c - 1)
    std = jnp.sqrt(var)
    return (gamma * (centered / (std + eps)) + beta).astype(x.dtype)


if __name__ == "__main__":
    B, T, C = 2, 8, 32
    key = jax.random.PRNGKey(0)
    x = jax.random.normal(key, (B, T, C), dtype=jnp.float32)

    # Deterministic parameter init matching torch.nn.Parameter(torch.ones / zeros)
    gamma = jnp.ones((C,), dtype=jnp.float32)
    beta = jnp.zeros((C,), dtype=jnp.float32)

    out = layer_norm(x, gamma, beta, eps=1e-6)
    out = jax.block_until_ready(out)

    ref = layer_norm_ref(x, gamma, beta, eps=1e-6)
    assert out.shape == (B, T, C)
    assert jnp.allclose(out, ref, atol=1e-5, rtol=1e-5), "mismatch vs reference"

    print("KERNEL_OK")
</pallas_src>

<mosaic_0001>
module attributes {stable_mosaic.version = 11 : i64} {
  func.func @_layernorm_kernel(%arg0: i32, %arg1: memref<8x32xf32, #tpu.memory_space<vmem>>, %arg2: memref<2x32xf32, #tpu.memory_space<vmem>>, %arg3: memref<8x32xf32, #tpu.memory_space<vmem>>) attributes {dimension_semantics = [#tpu.dimension_semantics<parallel>], iteration_bounds = array<i64: 2>, scalar_prefetch = 0 : i64, scratch_operands = 0 : i64, tpu.core_type = #tpu.core_type<tc>, window_params = [{transform_indices = @transform_0, window_bounds = array<i64: 8, 32>}, {pipeline_mode = #tpu.pipeline_mode<synchronous>, transform_indices = @transform_1, window_bounds = array<i64: 2, 32>}, {transform_indices = @transform_2, window_bounds = array<i64: 8, 32>}]} {
    %c0 = arith.constant 0 : index
    %c0_0 = arith.constant 0 : index
    %0 = vector.load %arg1[%c0, %c0_0] : memref<8x32xf32, #tpu.memory_space<vmem>>, vector<8x32xf32>
    %cst = arith.constant dense<0.000000e+00> : vector<8xf32>
    %1 = vector.multi_reduction <add>, %0, %cst [1] : vector<8x32xf32> to vector<8xf32>
    %2 = vector.shape_cast %1 : vector<8xf32> to vector<8x1xf32>
    %cst_1 = arith.constant 3.200000e+01 : f32
    %3 = vector.broadcast %cst_1 : f32 to vector<8x1xf32>
    %4 = arith.divf %2, %3 : vector<8x1xf32>
    %5 = vector.broadcast %4 : vector<8x1xf32> to vector<8x32xf32>
    %6 = arith.subf %0, %5 : vector<8x32xf32>
    %7 = arith.mulf %6, %6 : vector<8x32xf32>
    %cst_2 = arith.constant dense<0.000000e+00> : vector<8xf32>
    %8 = vector.multi_reduction <add>, %7, %cst_2 [1] : vector<8x32xf32> to vector<8xf32>
    %9 = vector.shape_cast %8 : vector<8xf32> to vector<8x1xf32>
    %cst_3 = arith.constant 3.100000e+01 : f32
    %10 = vector.broadcast %cst_3 : f32 to vector<8x1xf32>
    %11 = arith.divf %9, %10 : vector<8x1xf32>
    %12 = math.sqrt %11 : vector<8x1xf32>
    %cst_4 = arith.constant 9.99999997E-7 : f32
    %13 = vector.broadcast %cst_4 : f32 to vector<8x1xf32>
    %14 = arith.addf %12, %13 : vector<8x1xf32>
    %15 = tpu.reciprocal %14 {approx = true} : vector<8x1xf32> -> vector<8x1xf32>
    %16 = arith.mulf %14, %15 : vector<8x1xf32>
    %cst_5 = arith.constant 2.000000e+00 : f32
    %17 = vector.broadcast %cst_5 : f32 to vector<8x1xf32>
    %18 = arith.subf %17, %16 : vector<8x1xf32>
    %19 = arith.mulf %15, %18 : vector<8x1xf32>
    %c0_6 = arith.constant 0 : index
    %c0_7 = arith.constant 0 : index
    %20 = vector.load %arg2[%c0_6, %c0_7] : memref<2x32xf32, #tpu.memory_space<vmem>>, vector<1x32xf32>
    %c1 = arith.constant 1 : index
    %c0_8 = arith.constant 0 : index
    %21 = vector.load %arg2[%c1, %c0_8] : memref<2x32xf32, #tpu.memory_space<vmem>>, vector<1x32xf32>
    %22 = vector.broadcast %19 : vector<8x1xf32> to vector<8x32xf32>
    %23 = arith.mulf %6, %22 : vector<8x32xf32>
    %24 = vector.broadcast %20 : vector<1x32xf32> to vector<8x32xf32>
    %25 = arith.mulf %24, %23 : vector<8x32xf32>
    %26 = vector.broadcast %21 : vector<1x32xf32> to vector<8x32xf32>
    %27 = arith.addf %25, %26 : vector<8x32xf32>
    %c0_9 = arith.constant 0 : index
    %c0_10 = arith.constant 0 : index
    %28 = vector.load %arg3[%c0_9, %c0_10] : memref<8x32xf32, #tpu.memory_space<vmem>>, vector<8x32xf32>
    tpu.vector_store %arg3[%c0_9, %c0_10], %27 {strides = array<i32>} : memref<8x32xf32, #tpu.memory_space<vmem>>, vector<8x32xf32>,
    return
  }
  func.func @transform_0(%arg0: i32) -> (i32, i32) {
    %c0_i32 = arith.constant 0 : i32
    %c0_i32_0 = arith.constant 0 : i32
    return %arg0, %c0_i32 : i32, i32
  }
  func.func @transform_1(%arg0: i32) -> (i32, i32) {
    %c0_i32 = arith.constant 0 : i32
    %c0_i32_0 = arith.constant 0 : i32
    %c0_i32_1 = arith.constant 0 : i32
    return %c0_i32, %c0_i32_0 : i32, i32
  }
  func.func @transform_2(%arg0: i32) -> (i32, i32) {
    %c0_i32 = arith.constant 0 : i32
    %c0_i32_0 = arith.constant 0 : i32
    return %arg0, %c0_i32 : i32, i32
  }
}

</mosaic_0001>

<bundles_post_ra>
// kernel: tpu_custom_call.1
= control target key start
LH: loop header
LB: loop body
LE: loop exit
PB: predicated region body
PF: predicated region fallthrough
CT: control target
= control target key end

     0   :  { %7 = vsyncpa [#allocation3], 0  ;;  %s698_s0 = inlined_call_operand.hbm [shape: f32[16,32], index: 0, kind: input, shape index: {}]   ;;  %s699_s1 = inlined_call_operand.hbm [shape: f32[2,32], index: 1, kind: input, shape index: {}]   ;;  %s700_s2 = inlined_call_operand.hbm [shape: f32[16,32], index: 2, kind: output, shape index: {}]  }
   0x1   :  { %9 = vsyncpa [#allocation3 + $0x1], 0 }
   0x2   :  { %10 = vsyncpa [#allocation6], 0 }
   0x3   :  { %11 = vsyncpa [#allocation4], 0 }
   0x4   :  { %13 = vsyncpa [#allocation4 + $0x1], 0  ;;  %s525_s9 = smov 0   ;;  %s527_s10 = smov 0  }
   0x5   :  { %s529_s11 = smov 0   ;;  %s531_s12 = smov 0  }
   0x6 LB: > { %s546_s13 = sadd.s32 4294967295, %s505_s12   ;;  %s306_s14 = sadd.s32 4294967294, %s505_s12   ;;  %s505_s12 = sphi %s531_s12, %s723_s12   ;;  %s501_s11 = sphi %s529_s11, %s722_s11   ;;  %s497_s10 = sphi %s527_s10, %s721_s10   ;;  %s493_s9 = sphi %s525_s9, %s720_s9  }
   0x7   : > { %p39_p0 = scmp.ne.s32.totalorder %s497_s10, %s493_s9  ;;  %p701_p1 = scmp.eq.s32.totalorder %s546_s13, 0 }
   0x8   : > { %p90_p3 = scmp.eq.s32.totalorder %s306_s14, 1  ;;  %p307_p5 = scmp.ge.s32.totalorder %s505_s12, 1 }
   0x9   : > { %p555_p4 = por %p701_p1, %p39_p0  ;;  %p97_p7 = scmp.lt.s32.totalorder %s505_s12, 3 }
   0xa   : > { %p560_p6 = por %p90_p3, %p39_p0  ;;  %s507_s18 = smov [#allocation5]  }
   0xb   : > { %s705_s15 = scalar_select %p555_p4, 1, 0 }
   0xc   : > { %s706_s16 = scalar_select %p560_p6, 1, 0 }
   0xd   : > { %p565_p8 = pnand %p307_p5, %p97_p7  ;;  %s110_s19 = sshll.u32 %s507_s18, 4  ;;  %s111_s19 = int_to_ptr.vmem [resolvable:$true] %s110_s19 }
   0xe   : > { %s573_s20 = sadd.s32 1, %s505_s12   ;;  %s26_s24 = sadd.s32 1, %s501_s11 }
   0xf   : > { %s707_s17 = scalar_select %p565_p8, 1, 0 }
  0x10   : > { %p330_p10 = pneg %p565_p8  ;;  %s23_s22 = ssub.s32 %s505_s12, %s573_s20 }
  0x11   : > { %p583_p12 = scmp.eq.s32.totalorder %s23_s22, 0  ;;  %p33_p13 = scmp.ne.s32.totalorder %s501_s11, %s497_s10 }
  0x12   : > { %p577_p11 = pnand %p330_p10, %p701_p1  ;;  %s394_s25 = scalar_lea.vmem %s111_s19, 32 }
  0x13   : > { %p395_p3 = scmp.ne.s32.totalorder %s111_s19, %s394_s25  ;;  %p402_p9 = scmp.lt.s32.totalorder %s111_s19, %s111_s19 }
  0x14   : > { %p385_p0 = pneg %p577_p11  ;;  %p403_p2 = scmp.lt.s32.totalorder %s394_s25, %s394_s25 }
  0x16   : > { %p397_p5 = pnand %p395_p3, %p385_p0  ;;  %p404_p10 = por %p403_p2, %p402_p9 }
  0x18   : > { %p398_p7 = pneg %p397_p5 }
  0x1a   : > { %p405_p1 = pnand %p404_p10, %p398_p7 }
  0x1c   : > { %408 = shalt.err (!%p405_p1)
}
  0x1d   : > { %333 = dma.hbm_to_vmem [thread:$0]  (!%p577_p11), %s699_s1, 32, %s111_s19, [#allocation6]  }
  0x1e   : > { %s600_s28 = scalar_select %p583_p12, %s501_s11, %s26_s24  }
  0x1f   : > { %p34_p1 = scmp.eq.s32.totalorder %s505_s12, 0  ;;  %p710_p2 = scmp.eq.s32.totalorder %s546_s13, 1 }
  0x20   : > { %p343_p0 = scmp.lt.s32.totalorder %s505_s12, 2  ;;  %s121_s30 = sand.u32 1, %s501_s11  }
  0x21   : > { %p608_p9 = por %p710_p2, %p33_p13  ;;  %p35_p3 = por %p34_p1, %p33_p13 }
  0x22   : > { %s310_s3 = sshll.u32 %s121_s30, 3  ;;  %s311_s4 = sshll.u32 %s505_s12, 7 }
  0x23   : > { %s711_s29 = scalar_select %p608_p9, 1, 0 }
  0x24   : > { %s621_s7 = scalar_lea.hbm %s698_s0, %s311_s4  ;;  %s125_s8 = scalar_lea.vmem [#allocation2], %s310_s3 }
  0x25   : > { %s132_s14 = sshll.u32 %s125_s8, 4  ;;  %p623_p11 = pnand %p343_p0, %p35_p3  ;;  %s133_s14 = int_to_ptr.vmem [resolvable:$true] %s132_s14 }
  0x26   : > { %s122_s19 = scalar_lea.sflag [#allocation3], %s121_s30  ;;  %s409_s21 = scalar_lea.hbm %s621_s7, 128 }
  0x27   : > { %p410_p12 = scmp.ne.s32.totalorder %s621_s7, %s409_s21  ;;  %p411_p13 = pneg %p623_p11 }
  0x28   : > { %s414_s24 = scalar_lea.hbm %s698_s0, 256  ;;  %p415_p10 = scmp.lt.s32.totalorder %s621_s7, %s698_s0 }
  0x29   : > { %p412_p5 = pnand %p411_p13, %p410_p12  ;;  %p416_p1 = scmp.lt.s32.totalorder %s414_s24, %s409_s21 }
  0x2b   : > { %p413_p7 = pneg %p412_p5  ;;  %p417_p2 = por %p416_p1, %p415_p10 }
  0x2d   : > { %p418_p0 = pnand %p417_p2, %p413_p7 }
  0x2f   : > { %421 = shalt.err (!%p418_p0)
}
  0x30   : > { %s422_s27 = scalar_lea.vmem %s133_s14, 128  ;;  %s508_s30 = smov [#allocation2]  }
  0x31   : > { %p423_p3 = scmp.ne.s32.totalorder %s133_s14, %s422_s27  ;;  %s427_s3 = sshll.u32 %s508_s30, 4  ;;  %s428_s3 = int_to_ptr.vmem [resolvable:$false] %s427_s3 }
  0x32   : > { %s429_s4 = scalar_lea.vmem %s428_s3, 256  ;;  %p430_p12 = scmp.lt.s32.totalorder %s133_s14, %s428_s3 }
  0x33   : > { %p425_p6 = pnand %p423_p3, %p411_p13  ;;  %p431_p5 = scmp.lt.s32.totalorder %s429_s4, %s422_s27 }
  0x35   : > { %p426_p9 = pneg %p425_p6  ;;  %p432_p4 = por %p431_p5, %p430_p12 }
  0x37   : > { %p433_p8 = pnand %p432_p4, %p426_p9 }
  0x39   : > { %436 = shalt.err (!%p433_p8)
}
  0x3a   : > { %337 = dma.hbm_to_vmem [thread:$0]  (!%p623_p11), %s621_s7, 128, %s133_s14, %s122_s19  }
  0x3b   : > { %p713_p7 = scmp.ne.s32.totalorder %s707_s17, 0 }
  0x3c   : > { %s644_s5 = sand.u32 (!%p713_p7), 1, %s497_s10   ;;  %p714_p4 = scmp.ne.s32.totalorder (!%p713_p7), %s705_s15, 0 }
  0x3d   : > { %141 = sbr.rel (%p713_p7) target bundleno = 416 (0x1a0), region = 28  ;;  %s313_s6 = sshll.u32 (!%p713_p7), %s644_s5, 3 }
  0x3e   : > { %s144_s8 = scalar_lea.sflag (!%p713_p7), [#allocation3], %s644_s5  ;;  %s147_s21 = scalar_lea.vmem (!%p713_p7), [#allocation2], %s313_s6 }
  0x42   : > { %480 = dma.done.wait (%p714_p4), %s144_s8, 128  }
  0x43   : > { %482 = vsyncadd (%p714_p4), %s144_s8, 4294967168  ;;  %p715_p6 = scmp.eq.s32.totalorder %s546_s13, 0 }
  0x45   : > { %484 = dma.done.wait (%p715_p6), [#allocation6], 32   ;;  %p716_p8 = pmov %p715_p6 }
  0x46   : > { %vm173_vm0 = vcmask 261120   ;;  %v172_v0 = vld [vmem:[%s147_s21] sm:$0xff]  ;;  %v316_v19 = vld [vmem:[#allocation5] ss:$0 sm:$0xff]  ;;  %v317_v21 = vld [vmem:[#allocation5 + $0x1] ss:$0 sm:$0xff] }
  0x47   : > { %486 = vsyncadd (%p716_p8), [#allocation6], 4294967264  ;;  %v174_v1 = vsel %vm173_vm0, %v172_v0, 0.0  ;;  %s319_s15 = sshll.u32 %s546_s13, 7  ;;  %s171_s17 = scalar_lea.vmem [#allocation7], %s313_s6 }
  0x48   : > { %175 = vadd.xlane.f32.xlu0 %v174_v1  ;;  %s226_s7 = sshll.u32 %s171_s17, 4  ;;  %s224_s19 = scalar_lea.hbm %s700_s2, %s319_s15  ;;  %s227_s7 = int_to_ptr.vmem [resolvable:$true] %s226_s7 }
  0x49   : > { %s213_s22 = scalar_lea.sflag [#allocation4], %s644_s5  ;;  %s437_s23 = scalar_lea.vmem %s227_s7, 128 }
  0x4a   : > { %p438_p9 = scmp.ne.s32.totalorder %s227_s7, %s437_s23  ;;  %p717_p11 = scmp.ne.s32.totalorder %s711_s29, 0 }
  0x4b   : > { %s509_s24 = smov [#allocation7]  }
  0x4c   : > { %p439_p13 = pnand %p438_p9, %p717_p11  ;;  %s441_s13 = sshll.u32 %s509_s24, 4  ;;  %s442_s13 = int_to_ptr.vmem [resolvable:$false] %s441_s13 }
  0x4d   : > { %s443_s25 = scalar_lea.vmem %s442_s13, 256  ;;  %p444_p1 = scmp.lt.s32.totalorder %s227_s7, %s442_s13 }
  0x4e   : > { %p440_p10 = pneg %p439_p13  ;;  %p445_p2 = scmp.lt.s32.totalorder %s443_s25, %s437_s23 }
  0x50   : > { %p446_p0 = por %p445_p2, %p444_p1 }
  0x52   : > { %p447_p3 = pnand %p446_p0, %p440_p10 }
  0xd1   : > { %v176_v2 = vpop.xlane.xlu0 %175 }
  0xd2   : > { %v178_v3 = vmul.f32 0.03125, %v176_v2 }
  0xd4   : > { %v179_v4 = vsub.f32 %v172_v0, %v178_v3 }
  0xd6   : > { %v180_v5 = vmul.f32 %v179_v4, %v179_v4 }
  0xd8   : > { %v181_v6 = vsel %vm173_vm0, %v180_v5, 0.0 }
  0xd9   : > { %182 = vadd.xlane.f32.xlu0 %v181_v6 }
 0x162   : > { %v183_v7 = vpop.xlane.xlu0 %182 }
 0x163   : > { %v185_v8 = vmul.f32 0.032258064, %v183_v7 }
 0x165   : > { %379 = vrsqrt.f32 %v185_v8  ;;  %vm188_vm1 = vcmp.eq.f32.partialorder %v185_v8, inf  ;;  %v191_v11 = vand.u32 2147483648, %v185_v8  ;;  %vm190_vm2 = vcmp.eq.f32.partialorder %v185_v8, 0.0 }
 0x172   : > { %v380_v9 = vpop.eup %379 }
 0x173   : > { %v187_v10 = vmul.f32 %v380_v9, %v185_v8 }
 0x175   : > { %v189_v12 = vsel %vm188_vm1, %v185_v8, %v187_v10 }
 0x176   : > { %v192_v13 = vsel %vm190_vm2, %v191_v11, %v189_v12 }
 0x177   : > { %v193_v14 = vadd.f32 1e-06, %v192_v13 }
 0x179   : > { %381 = vrcp.f32 %v193_v14 }
 0x186   : > { %v382_v15 = vpop.eup %381 }
 0x187   : > { %v195_v16 = vmul.f32 %v382_v15, %v193_v14 }
 0x189   : > { %v196_v17 = vsub.f32 2.0, %v195_v16 }
 0x18b   : > { %v197_v18 = vmul.f32 %v382_v15, %v196_v17 }
 0x18d   : > { %v200_v20 = vmul.f32 %v197_v18, %v179_v4 }
 0x18f   : > { %v205_v22 = vmul.f32 %v316_v19, %v200_v20 }
 0x191   : > { %v210_v23 = vadd.f32 %v317_v21, %v205_v22 }
 0x193   : > { %211 = vst.msk [vmem:[%s171_s17] sm:$0xff] %vm173_vm0, %v210_v23 }
 0x194   : > { %450 = shalt.err (!%p447_p3)
}
 0x195   : > { %s451_s26 = scalar_lea.hbm %s224_s19, 128  ;;  %s455_s3 = scalar_lea.hbm %s700_s2, 256 }
 0x196   : > { %p452_p12 = scmp.ne.s32.totalorder %s224_s19, %s451_s26  ;;  %p456_p4 = scmp.lt.s32.totalorder %s224_s19, %s700_s2 }
 0x197   : > { %p457_p6 = scmp.lt.s32.totalorder %s455_s3, %s451_s26 }
 0x198   : > { %p453_p5 = pnand %p452_p12, %p717_p11 }
 0x199   : > { %p458_p8 = por %p457_p6, %p456_p4 }
 0x19a   : > { %p454_p7 = pneg %p453_p5 }
 0x19c   : > { %p459_p9 = pnand %p458_p8, %p454_p7 }
 0x19e   : > { %462 = shalt.err (!%p459_p9)
}
 0x19f   : > { %328 = dma.vmem_to_hbm [thread:$0]  (%p717_p11), %s227_s7, 128, %s224_s19, %s213_s22  }
 0x1a0 PF: > { %s238_s6 = sand.u32 1, %s493_s9   ;;  %p718_p13 = scmp.ne.s32.totalorder %s706_s16, 0 }
 0x1a1   : > { %p719_p10 = scmp.ge.s32.totalorder %s505_s12, 2  ;;  %s239_s8 = scalar_lea.sflag [#allocation4], %s238_s6 }
 0x1a3   : > { %p339_p1 = pnand %p719_p10, %p718_p13 }
 0x1a5   : > { %p340_p2 = pneg %p339_p1 }
 0x1a7   : > { %488 = dma.done.wait (%p340_p2), %s239_s8, 128  }
 0x1a8   : > { %490 = vsyncadd (%p340_p2), %s239_s8, 4294967168  ;;  %p16_p0 = scmp.ge.s32.totalorder %s573_s20, 4   ;;  %s720_s9 = smov %s497_s10 }
 0x1a9   : > { %s721_s10 = smov %s501_s11  ;;  %s722_s11 = smov %s600_s28 }
 0x1aa   : > { %s723_s12 = smov %s573_s20  ;;  %18 = sbr.rel (!%p16_p0) target bundleno = 6 (0x6), region = 77 }
 0x1af   :  { %244 = vsyncpa [#allocation3], 1 }
 0x1b0   :  { %246 = vsyncpa [#allocation3 + $0x1], 1 }
 0x1b1   :  { %247 = vsyncpa [#allocation6], 1 }
 0x1b2   :  { %248 = vsyncpa [#allocation4], 1 }
 0x1b3   :  { %250 = vsyncpa [#allocation4 + $0x1], 1 }

</bundles_post_ra>
